<compile_context>
chip_gen: v5e
topology: v5e:2x2
jax: 0.10.0
libtpu: 0.0.40
codegen_flags: <defaults>
</compile_context>

<pallas_src>
import jax
import jax.numpy as jnp
from jax.experimental import pallas as pl
from jax.experimental.pallas import tpu as pltpu

LANES = 128
MAX_ROW_TILE = 4096  # (4096, 128) f32 = 2 MiB per input block


def _cdiv(a, b):
    return -(-a // b)


def _round_up(a, b):
    return _cdiv(a, b) * b


def _tensorcores_per_chip():
    """Best-effort count of TensorCores a single kernel launch can shard across."""
    try:
        info = pltpu.get_tpu_info()
        for name in ("num_cores", "num_tensorcores", "tensorcores_per_chip",
                     "num_cores_per_chip", "core_count"):
            v = getattr(info, name, None)
            if isinstance(v, int) and 1 <= v <= 8:
                return v
    except Exception:
        pass
    try:
        kind = jax.devices()[0].device_kind.lower()
    except Exception:
        return 1
    # v7x has 2 TCs per chip; v4/v5p expose 2 via megacore. v5e/v6e have 1.
    if ("v7" in kind) or ("v4" in kind) or ("v5p" in kind):
        return 2
    return 1


def _plan_tiling(rows, num_tc, sub):
    """Pick (nsplit, blocks_per_split, row_tile).

    Guarantees nsplit * bps == cdiv(rows, row_tile), so every grid block starts
    in-bounds; at most the globally-last block is partial (masked in-kernel).
    `sub` is the sublane quantum for the narrowest input dtype (8/16/32).
    """
    if rows < sub:
        return 1, 1, rows  # single full-extent block (block dims == array dims)

    def try_split(nsplit):
        target_blocks = _round_up(max(nsplit, _cdiv(rows, MAX_ROW_TILE)), nsplit)
        row_tile = min(MAX_ROW_TILE,
                       _round_up(_cdiv(rows, target_blocks), sub),
                       (rows // sub) * sub)
        num_blocks = _cdiv(rows, row_tile)
        if num_blocks % nsplit:
            return None
        return nsplit, num_blocks // nsplit, row_tile

    if num_tc >= 2:
        plan = try_split(2)  # shard the reduction across both TensorCores
        if plan is not None:
            return plan
    return try_split(1)


def _make_kernel(row_tile, bps, valid_rows, mask_tail, binary_targets):
    reduce_to_vreg = (row_tile % 8 == 0)

    def vreg_sum(v):
        # (row_tile, 128) -> (8, 128): fold to one vreg with pure VPU adds over the
        # major axis (minor (8,128) tile is untouched -> no relayout, no XLU).
        if reduce_to_vreg:
            return jnp.sum(v.reshape(row_tile // 8, 8, LANES), axis=0)
        return v

    def kernel(x_ref, t_ref, o_ref, bce_acc, prod_acc, sxt_acc):
        j = pl.program_id(1)

        @pl.when(j == 0)
        def _init():
            bce_acc[...] = jnp.zeros_like(bce_acc)
            prod_acc[...] = jnp.zeros_like(prod_acc)
            sxt_acc[...] = jnp.zeros_like(sxt_acc)

        x = x_ref[...].astype(jnp.float32)
        t = t_ref[...].astype(jnp.float32)

        if mask_tail:
            # Neutralize the garbage rows of the (single) partial block:
            # x=0, t=0 contributes exactly zero to every accumulator.
            b = pl.program_id(0) * bps + j
            row = b * row_tile + jax.lax.broadcasted_iota(
                jnp.int32, (row_tile, LANES), 0)
            valid = row < valid_rows
            x = jnp.where(valid, x, 0.0)
            t = jnp.where(valid, t, 0.0)

        if binary_targets:
            # One EUP log per element (keeps v7x on the HBM roofline).
            # Only valid for {0,1} targets.
            p_correct = jnp.where(t > 0.5, x, 1.0 - x)
            bce = -jnp.maximum(jnp.log(p_correct), -100.0)
        else:
            # torch.nn.BCELoss clamps log outputs at -100; this also makes zeroed
            # padding/masked rows exactly neutral (x=0, t=0 -> term 0).
            log_x = jnp.maximum(jnp.log(x), -100.0)
            log_1mx = jnp.maximum(jnp.log(1.0 - x), -100.0)
            bce = -(t * log_x + (1.0 - t) * log_1mx)

        bce_acc[...] += vreg_sum(bce)
        prod_acc[...] += vreg_sum(x * t)
        sxt_acc[...] += vreg_sum(x + t)  # sum(x) + sum(t) fused into one accumulator

        @pl.when(j == pl.num_programs(1) - 1)
        def _finalize():
            # Single cheap XLU reduce per split; pack the three partial sums into
            # sublanes 0/1/2 of a lane-dense output block.
            bce_s = jnp.sum(bce_acc[...])
            prod_s = jnp.sum(prod_acc[...])
            sxt_s = jnp.sum(sxt_acc[...])
            row8 = jax.lax.broadcasted_iota(jnp.int32, (1, 8, LANES), 1)
            o_ref[...] = jnp.where(
                row8 == 0, bce_s,
                jnp.where(row8 == 1, prod_s, jnp.where(row8 == 2, sxt_s, 0.0)))

    return kernel


def bce_dice_loss(inputs, targets, smooth=1.0, binary_targets=False):
    """BCE + Dice loss over all elements (any shape), computed in Pallas.

    `binary_targets=True` enables a one-log-per-element fast path that is only
    correct for {0,1} targets (torch.nn.BCELoss also accepts fractional ones).
    """
    assert inputs.shape == targets.shape
    total = int(inputs.size)

    x = inputs.reshape(-1)
    t = targets.reshape(-1)

    itemsize = min(inputs.dtype.itemsize, targets.dtype.itemsize)
    sub = max(8, 32 // itemsize)  # sublane quantum: 8 (4B), 16 (2B), 32 (1B)

    # Only pad up to the next lane multiple (<=127 elements); totals already divisible
    # by 128 take the copy-free pure-reshape path. Non-divisible row counts are handled
    # by partial blocks + in-kernel masking, NOT by padding to the full tile grid.
    # TODO(synk): a sub-128 tail could be folded host-side to avoid this pad copy too.
    padded_total = _round_up(total, LANES)
    if padded_total != total:
        x = jnp.pad(x, (0, padded_total - total))
        t = jnp.pad(t, (0, padded_total - total))

    rows = padded_total // LANES
    x2 = x.reshape(rows, LANES)
    t2 = t.reshape(rows, LANES)

    nsplit, bps, row_tile = _plan_tiling(rows, _tensorcores_per_chip(), sub)
    mask_tail = (rows % row_tile) != 0
    acc_rows = 8 if (row_tile % 8 == 0) else row_tile

    kernel = _make_kernel(row_tile, bps, rows, mask_tail, binary_targets)

    def in_map(s, j):
        return (s * bps + j, 0)

    partials = pl.pallas_call(
        kernel,
        out_shape=jax.ShapeDtypeStruct((nsplit, 8, LANES), jnp.float32),
        grid_spec=pltpu.PrefetchScalarGridSpec(
            num_scalar_prefetch=0,
            grid=(nsplit, bps),
            in_specs=[
                pl.BlockSpec((row_tile, LANES), in_map),
                pl.BlockSpec((row_tile, LANES), in_map),
            ],
            out_specs=pl.BlockSpec((1, 8, LANES), lambda s, j: (s, 0, 0)),
            scratch_shapes=[pltpu.VMEM((acc_rows, LANES), jnp.float32)] * 3,
        ),
        compiler_params=pltpu.CompilerParams(
            dimension_semantics=("parallel", "arbitrary")),
    )(x2, t2)

    # Tiny final combine (scalar math) in plain JAX.
    bce_sum = jnp.sum(partials[:, 0, 0])
    inter = jnp.sum(partials[:, 1, 0])
    sum_xt = jnp.sum(partials[:, 2, 0])

    bce_mean = bce_sum / jnp.float32(total)
    dice = (2.0 * inter + smooth) / (sum_xt + smooth)
    return bce_mean + (1.0 - dice)


def _reference(inputs, targets, smooth=1.0):
    x = inputs.reshape(-1).astype(jnp.float32)
    t = targets.reshape(-1).astype(jnp.float32)
    log_x = jnp.maximum(jnp.log(x), -100.0)
    log_1mx = jnp.maximum(jnp.log(1.0 - x), -100.0)
    bce = jnp.mean(-(t * log_x + (1.0 - t) * log_1mx))
    inter = jnp.sum(x * t)
    dice = (2.0 * inter + smooth) / (jnp.sum(x) + jnp.sum(t) + smooth)
    return bce + (1.0 - dice)


if __name__ == "__main__":
    key = jax.random.PRNGKey(0)
    k1, k2, k3, k4 = jax.random.split(key, 4)

    # NCHW, like the PyTorch module would receive after a sigmoid head.
    B, C, H, W = 2, 4, 16, 16
    inputs = jax.nn.sigmoid(jax.random.normal(k1, (B, C, H, W), jnp.float32))
    targets = (jax.random.uniform(k2, (B, C, H, W)) > 0.5).astype(jnp.float32)

    loss = jax.block_until_ready(bce_dice_loss(inputs, targets))
    ref = jax.block_until_ready(_reference(inputs, targets))
    assert jnp.allclose(loss, ref, rtol=1e-5, atol=1e-5), (loss, ref)

    # Non-divisible element count (1155 elements) exercises the partial-block
    # masking path (only a <=127-element pad to the next lane multiple).
    shape2 = (3, 5, 7, 11)
    inputs2 = jax.nn.sigmoid(jax.random.normal(k3, shape2, jnp.float32))
    targets2 = (jax.random.uniform(k4, shape2) > 0.5).astype(jnp.float32)

    loss2 = jax.block_until_ready(bce_dice_loss(inputs2, targets2))
    ref2 = jax.block_until_ready(_reference(inputs2, targets2))
    assert jnp.allclose(loss2, ref2, rtol=1e-5, atol=1e-5), (loss2, ref2)

    # Binary-targets fast path (one log per element) agrees for {0,1} targets.
    loss3 = jax.block_until_ready(bce_dice_loss(inputs, targets, binary_targets=True))
    assert jnp.allclose(loss3, ref, rtol=1e-5, atol=1e-5), (loss3, ref)

    print("KERNEL_OK")
</pallas_src>

<mosaic_0001>
module attributes {stable_mosaic.version = 11 : i64} {
  func.func @kernel(%arg0: i32, %arg1: i32, %arg2: memref<16x128xf32, #tpu.memory_space<vmem>>, %arg3: memref<16x128xf32, #tpu.memory_space<vmem>>, %arg4: memref<1x8x128xf32, #tpu.memory_space<vmem>>, %arg5: memref<8x128xf32, #tpu.memory_space<vmem>>, %arg6: memref<8x128xf32, #tpu.memory_space<vmem>>, %arg7: memref<8x128xf32, #tpu.memory_space<vmem>>) attributes {dimension_semantics = [#tpu.dimension_semantics<parallel>, #tpu.dimension_semantics<arbitrary>], iteration_bounds = array<i64: 1, 1>, scalar_prefetch = 0 : i64, scratch_operands = 3 : i64, tpu.core_type = #tpu.core_type<tc>, window_params = [{transform_indices = @transform_0, window_bounds = array<i64: 16, 128>}, {transform_indices = @transform_1, window_bounds = array<i64: 16, 128>}, {transform_indices = @transform_2, window_bounds = array<i64: 1, 8, 128>}]} {
    %c0_i32 = arith.constant 0 : i32
    %0 = arith.cmpi eq, %arg1, %c0_i32 : i32
    %1 = arith.extui %0 : i1 to i32
    %c0_i32_0 = arith.constant 0 : i32
    %2 = arith.cmpi ne, %1, %c0_i32_0 : i32
    scf.if %2 {
      %cst_25 = arith.constant 0.000000e+00 : f32
      %40 = vector.broadcast %cst_25 : f32 to vector<8x128xf32>
      %c0_26 = arith.constant 0 : index
      %c0_27 = arith.constant 0 : index
      %41 = vector.load %arg5[%c0_26, %c0_27] : memref<8x128xf32, #tpu.memory_space<vmem>>, vector<8x128xf32>
      tpu.vector_store %arg5[%c0_26, %c0_27], %40 {strides = array<i32>} : memref<8x128xf32, #tpu.memory_space<vmem>>, vector<8x128xf32>,
      %cst_28 = arith.constant 0.000000e+00 : f32
      %42 = vector.broadcast %cst_28 : f32 to vector<8x128xf32>
      %c0_29 = arith.constant 0 : index
      %c0_30 = arith.constant 0 : index
      %43 = vector.load %arg6[%c0_29, %c0_30] : memref<8x128xf32, #tpu.memory_space<vmem>>, vector<8x128xf32>
      tpu.vector_store %arg6[%c0_29, %c0_30], %42 {strides = array<i32>} : memref<8x128xf32, #tpu.memory_space<vmem>>, vector<8x128xf32>,
      %cst_31 = arith.constant 0.000000e+00 : f32
      %44 = vector.broadcast %cst_31 : f32 to vector<8x128xf32>
      %c0_32 = arith.constant 0 : index
      %c0_33 = arith.constant 0 : index
      %45 = vector.load %arg7[%c0_32, %c0_33] : memref<8x128xf32, #tpu.memory_space<vmem>>, vector<8x128xf32>
      tpu.vector_store %arg7[%c0_32, %c0_33], %44 {strides = array<i32>} : memref<8x128xf32, #tpu.memory_space<vmem>>, vector<8x128xf32>,
    } else {
    }
    %c0 = arith.constant 0 : index
    %c0_1 = arith.constant 0 : index
    %3 = vector.load %arg2[%c0, %c0_1] : memref<16x128xf32, #tpu.memory_space<vmem>>, vector<16x128xf32>
    %c0_2 = arith.constant 0 : index
    %c0_3 = arith.constant 0 : index
    %4 = vector.load %arg3[%c0_2, %c0_3] : memref<16x128xf32, #tpu.memory_space<vmem>>, vector<16x128xf32>
    %5 = math.log %3 : vector<16x128xf32>
    %cst = arith.constant -1.000000e+02 : f32
    %6 = vector.broadcast %cst : f32 to vector<16x128xf32>
    %7 = arith.maximumf %5, %6 : vector<16x128xf32>
    %cst_4 = arith.constant 1.000000e+00 : f32
    %8 = vector.broadcast %cst_4 : f32 to vector<16x128xf32>
    %9 = arith.subf %8, %3 : vector<16x128xf32>
    %10 = math.log %9 : vector<16x128xf32>
    %cst_5 = arith.constant -1.000000e+02 : f32
    %11 = vector.broadcast %cst_5 : f32 to vector<16x128xf32>
    %12 = arith.maximumf %10, %11 : vector<16x128xf32>
    %13 = arith.mulf %4, %7 : vector<16x128xf32>
    %cst_6 = arith.constant 1.000000e+00 : f32
    %14 = vector.broadcast %cst_6 : f32 to vector<16x128xf32>
    %15 = arith.subf %14, %4 : vector<16x128xf32>
    %16 = arith.mulf %15, %12 : vector<16x128xf32>
    %17 = arith.addf %13, %16 : vector<16x128xf32>
    %cst_7 = arith.constant 0.000000e+00 : f32
    %18 = vector.broadcast %cst_7 : f32 to vector<16x128xf32>
    %19 = arith.subf %18, %17 : vector<16x128xf32>
    %c0_8 = arith.constant 0 : index
    %c0_9 = arith.constant 0 : index
    %20 = vector.load %arg5[%c0_8, %c0_9] : memref<8x128xf32, #tpu.memory_space<vmem>>, vector<8x128xf32>
    %21 = vector.shape_cast %19 : vector<16x128xf32> to vector<2x8x128xf32>
    %cst_10 = arith.constant dense<0.000000e+00> : vector<8x128xf32>
    %22 = vector.multi_reduction <add>, %21, %cst_10 [0] : vector<2x8x128xf32> to vector<8x128xf32>
    %23 = arith.addf %20, %22 : vector<8x128xf32>
    %c0_11 = arith.constant 0 : index
    %c0_12 = arith.constant 0 : index
    %24 = vector.load %arg5[%c0_11, %c0_12] : memref<8x128xf32, #tpu.memory_space<vmem>>, vector<8x128xf32>
    tpu.vector_store %arg5[%c0_11, %c0_12], %23 {strides = array<i32>} : memref<8x128xf32, #tpu.memory_space<vmem>>, vector<8x128xf32>,
    %c0_13 = arith.constant 0 : index
    %c0_14 = arith.constant 0 : index
    %25 = vector.load %arg6[%c0_13, %c0_14] : memref<8x128xf32, #tpu.memory_space<vmem>>, vector<8x128xf32>
    %26 = arith.mulf %3, %4 : vector<16x128xf32>
    %27 = vector.shape_cast %26 : vector<16x128xf32> to vector<2x8x128xf32>
    %cst_15 = arith.constant dense<0.000000e+00> : vector<8x128xf32>
    %28 = vector.multi_reduction <add>, %27, %cst_15 [0] : vector<2x8x128xf32> to vector<8x128xf32>
    %29 = arith.addf %25, %28 : vector<8x128xf32>
    %c0_16 = arith.constant 0 : index
    %c0_17 = arith.constant 0 : index
    %30 = vector.load %arg6[%c0_16, %c0_17] : memref<8x128xf32, #tpu.memory_space<vmem>>, vector<8x128xf32>
    tpu.vector_store %arg6[%c0_16, %c0_17], %29 {strides = array<i32>} : memref<8x128xf32, #tpu.memory_space<vmem>>, vector<8x128xf32>,
    %c0_18 = arith.constant 0 : index
    %c0_19 = arith.constant 0 : index
    %31 = vector.load %arg7[%c0_18, %c0_19] : memref<8x128xf32, #tpu.memory_space<vmem>>, vector<8x128xf32>
    %32 = arith.addf %3, %4 : vector<16x128xf32>
    %33 = vector.shape_cast %32 : vector<16x128xf32> to vector<2x8x128xf32>
    %cst_20 = arith.constant dense<0.000000e+00> : vector<8x128xf32>
    %34 = vector.multi_reduction <add>, %33, %cst_20 [0] : vector<2x8x128xf32> to vector<8x128xf32>
    %35 = arith.addf %31, %34 : vector<8x128xf32>
    %c0_21 = arith.constant 0 : index
    %c0_22 = arith.constant 0 : index
    %36 = vector.load %arg7[%c0_21, %c0_22] : memref<8x128xf32, #tpu.memory_space<vmem>>, vector<8x128xf32>
    tpu.vector_store %arg7[%c0_21, %c0_22], %35 {strides = array<i32>} : memref<8x128xf32, #tpu.memory_space<vmem>>, vector<8x128xf32>,
    %c0_i32_23 = arith.constant 0 : i32
    %37 = arith.cmpi eq, %arg1, %c0_i32_23 : i32
    %38 = arith.extui %37 : i1 to i32
    %c0_i32_24 = arith.constant 0 : i32
    %39 = arith.cmpi ne, %38, %c0_i32_24 : i32
    scf.if %39 {
      %c0_25 = arith.constant 0 : index
      %c0_26 = arith.constant 0 : index
      %40 = vector.load %arg5[%c0_25, %c0_26] : memref<8x128xf32, #tpu.memory_space<vmem>>, vector<8x128xf32>
      %41 = vector.shape_cast %40 : vector<8x128xf32> to vector<1x8x128xf32>
      %cst_27 = arith.constant dense<0.000000e+00> : vector<1xf32>
      %42 = vector.multi_reduction <add>, %41, %cst_27 [1, 2] : vector<1x8x128xf32> to vector<1xf32>
      %43 = vector.shape_cast %42 : vector<1xf32> to vector<1x1x1xf32>
      %44 = vector.extract %43[0, 0, 0] : f32 from vector<1x1x1xf32>
      %c0_28 = arith.constant 0 : index
      %c0_29 = arith.constant 0 : index
      %45 = vector.load %arg6[%c0_28, %c0_29] : memref<8x128xf32, #tpu.memory_space<vmem>>, vector<8x128xf32>
      %46 = vector.shape_cast %45 : vector<8x128xf32> to vector<1x8x128xf32>
      %cst_30 = arith.constant dense<0.000000e+00> : vector<1xf32>
      %47 = vector.multi_reduction <add>, %46, %cst_30 [1, 2] : vector<1x8x128xf32> to vector<1xf32>
      %48 = vector.shape_cast %47 : vector<1xf32> to vector<1x1x1xf32>
      %49 = vector.extract %48[0, 0, 0] : f32 from vector<1x1x1xf32>
      %c0_31 = arith.constant 0 : index
      %c0_32 = arith.constant 0 : index
      %50 = vector.load %arg7[%c0_31, %c0_32] : memref<8x128xf32, #tpu.memory_space<vmem>>, vector<8x128xf32>
      %51 = vector.shape_cast %50 : vector<8x128xf32> to vector<1x8x128xf32>
      %cst_33 = arith.constant dense<0.000000e+00> : vector<1xf32>
      %52 = vector.multi_reduction <add>, %51, %cst_33 [1, 2] : vector<1x8x128xf32> to vector<1xf32>
      %53 = vector.shape_cast %52 : vector<1xf32> to vector<1x1x1xf32>
      %54 = vector.extract %53[0, 0, 0] : f32 from vector<1x1x1xf32>
      %55 = tpu.iota {dimensions = array<i32: 1>} : vector<1x8x128xi32>
      %c0_i32_34 = arith.constant 0 : i32
      %56 = vector.broadcast %c0_i32_34 : i32 to vector<1x8x128xi32>
      %57 = arith.cmpi eq, %55, %56 : vector<1x8x128xi32>
      %c1_i32 = arith.constant 1 : i32
      %58 = vector.broadcast %c1_i32 : i32 to vector<1x8x128xi32>
      %59 = arith.cmpi eq, %55, %58 : vector<1x8x128xi32>
      %c2_i32 = arith.constant 2 : i32
      %60 = vector.broadcast %c2_i32 : i32 to vector<1x8x128xi32>
      %61 = arith.cmpi eq, %55, %60 : vector<1x8x128xi32>
      %cst_35 = arith.constant 0.000000e+00 : f32
      %62 = vector.broadcast %54 : f32 to vector<1x8x128xf32>
      %63 = vector.broadcast %cst_35 : f32 to vector<1x8x128xf32>
      %64 = arith.select %61, %62, %63 : vector<1x8x128xi1>, vector<1x8x128xf32>
      %65 = vector.broadcast %49 : f32 to vector<1x8x128xf32>
      %66 = arith.select %59, %65, %64 : vector<1x8x128xi1>, vector<1x8x128xf32>
      %67 = vector.broadcast %44 : f32 to vector<1x8x128xf32>
      %68 = arith.select %57, %67, %66 : vector<1x8x128xi1>, vector<1x8x128xf32>
      %c0_36 = arith.constant 0 : index
      %c0_37 = arith.constant 0 : index
      %c0_38 = arith.constant 0 : index
      %69 = vector.load %arg4[%c0_36, %c0_37, %c0_38] : memref<1x8x128xf32, #tpu.memory_space<vmem>>, vector<1x8x128xf32>
      tpu.vector_store %arg4[%c0_36, %c0_37, %c0_38], %68 {strides = array<i32>} : memref<1x8x128xf32, #tpu.memory_space<vmem>>, vector<1x8x128xf32>,
    } else {
    }
    return
  }
  func.func @transform_0(%arg0: i32, %arg1: i32) -> (i32, i32) {
    %c1_i32 = arith.constant 1 : i32
    %0 = arith.muli %arg0, %c1_i32 : i32
    %1 = arith.addi %0, %arg1 : i32
    %c0_i32 = arith.constant 0 : i32
    %c0_i32_0 = arith.constant 0 : i32
    return %1, %c0_i32 : i32, i32
  }
  func.func @transform_1(%arg0: i32, %arg1: i32) -> (i32, i32) {
    %c1_i32 = arith.constant 1 : i32
    %0 = arith.muli %arg0, %c1_i32 : i32
    %1 = arith.addi %0, %arg1 : i32
    %c0_i32 = arith.constant 0 : i32
    %c0_i32_0 = arith.constant 0 : i32
    return %1, %c0_i32 : i32, i32
  }
  func.func @transform_2(%arg0: i32, %arg1: i32) -> (i32, i32, i32) {
    %c0_i32 = arith.constant 0 : i32
    %c0_i32_0 = arith.constant 0 : i32
    %c0_i32_1 = arith.constant 0 : i32
    return %arg0, %c0_i32, %c0_i32_0 : i32, i32, i32
  }
}

</mosaic_0001>

<bundles_post_ra>
// kernel: tpu_custom_call.1
= control target key start
LH: loop header
LB: loop body
LE: loop exit
PB: predicated region body
PF: predicated region fallthrough
CT: control target
= control target key end

     0   :  { %7 = vsyncpa [#allocation6], 0  ;;  %s296_s0 = inlined_call_operand.hbm [shape: f32[16,128], index: 0, kind: input, shape index: {}]   ;;  %s297_s1 = inlined_call_operand.hbm [shape: f32[16,128], index: 1, kind: input, shape index: {}]   ;;  %s298_s2 = inlined_call_operand.hbm [shape: f32[1,8,128], index: 2, kind: output, shape index: {}]  }
   0x1   :  { %8 = vsyncpa [#allocation9], 0 }
   0x2   :  { %9 = vsyncpa [#allocation7], 0  ;;  %s18_s11 = sshll.u32 %s296_s0, 4  ;;  %s267_s12 = smov [#allocation5]   ;;  %s19_s11 = int_to_ptr.hbm [resolvable:$true] %s18_s11 }
   0x3   :  { %s20_s13 = sshll.u32 %s267_s12, 4  ;;  %s35_s16 = sshll.u32 %s297_s1, 4  ;;  %s21_s13 = int_to_ptr.vmem [resolvable:$true] %s20_s13  ;;  %s36_s16 = int_to_ptr.hbm [resolvable:$true] %s35_s16 }
   0x4   :  { %s268_s17 = smov 128   ;;  %s269_s18 = smov 8  }
   0x5   :  { %26 = dma.hbm_to_vmem [thread:$0]  %s19_s11, 256, %s21_s13, [#allocation6], %s268_s17, %s268_s17, %s269_s18  }
   0x6   :  { %s270_s19 = smov [#allocation8]  }
   0x7   :  { %s37_s20 = sshll.u32 %s270_s19, 4  ;;  %s38_s20 = int_to_ptr.vmem [resolvable:$true] %s37_s20 }
   0x8   :  { %43 = dma.hbm_to_vmem [thread:$0]  %s36_s16, 256, %s38_s20, [#allocation9], %s268_s17, %s268_s17, %s269_s18  }
   0x9   :  { %261 = dma.done.wait [#allocation6], 256  }
   0xa   :  { %262 = vsyncadd [#allocation6], 4294967040 }
   0xb   :  { %263 = dma.done.wait [#allocation9], 256  }
   0xc   :  { %264 = vsyncadd [#allocation9], 4294967040  ;;  %v63_v0 = vld [vmem:[#allocation5] sm:$0xff]  ;;  %v64_v1 = vld [vmem:[#allocation5 + $0x8] sm:$0xff]  ;;  %v140_v56 = vlaneseq  ;;  %s271_s21 = smov [#allocation10]   ;;  %s159_s26 = sshll.u32 %s298_s2, 4  ;;  %s160_s26 = int_to_ptr.hbm [resolvable:$true] %s159_s26 }
   0xd   :  { %v65_v2 = vld [vmem:[#allocation8] sm:$0xff]  ;;  %v66_v3 = vld [vmem:[#allocation8 + $0x8] sm:$0xff]  ;;  %181 = vlog2.f32 %v63_v0  ;;  %v73_v4 = vsub.f32 1.0, %v63_v0  ;;  %v74_v5 = vsub.f32 1.0, %v64_v1  ;;  %s157_s22 = sshll.u32 %s271_s21, 4  ;;  %s158_s22 = int_to_ptr.vmem [resolvable:$true] %s157_s22 }
   0xe   :  { %183 = vlog2.f32 %v64_v1  ;;  %v102_v6 = vadd.f32 %v65_v2, %v63_v0  ;;  %v103_v7 = vadd.f32 %v66_v3, %v64_v1  ;;  %v83_v17 = vsub.f32 1.0, %v65_v2 }
   0xf   :  { %185 = vlog2.f32 %v73_v4  ;;  %v84_v20 = vsub.f32 1.0, %v66_v3  ;;  %v96_v32 = vmul.f32 %v65_v2, %v63_v0  ;;  %v97_v33 = vmul.f32 %v66_v3, %v64_v1 }
  0x10   :  { %187 = vlog2.f32 %v74_v5  ;;  %v104_v8 = vadd.f32 %v103_v7, %v102_v6  ;;  %v141_v57 = vshrl.u32 %v140_v56, 7 }
  0x11   :  { %v98_v34 = vadd.f32 %v97_v33, %v96_v32 }
  0x12   :  { %131 = vadd.xlane.f32.xlu1 %v104_v8  ;;  %vm144_vm0 = vcmp.eq.s32.totalorder %v141_v57, 2  ;;  %vm143_vm1 = vcmp.eq.s32.totalorder %v141_v57, 1  ;;  %vm142_vm2 = vcmp.eq.s32.totalorder %v141_v57, 0 }
  0x13   :  { %v182_v9 = vpop.eup %181 }
  0x14   :  { %v184_v10 = vpop.eup %183  ;;  %v68_v11 = vmul.f32 0.6931472, %v182_v9 }
  0x15   :  { %v186_v12 = vpop.eup %185  ;;  %v70_v13 = vmul.f32 0.6931472, %v184_v10 }
  0x16   :  { %v188_v14 = vpop.eup %187  ;;  %v71_v15 = vmax.f32 %v68_v11, -100.0  ;;  %v76_v16 = vmul.f32 0.6931472, %v186_v12 }
  0x17   :  { %v72_v18 = vmax.f32 %v70_v13, -100.0  ;;  %v78_v19 = vmul.f32 0.6931472, %v188_v14 }
  0x18   :  { %v79_v21 = vmax.f32 %v76_v16, -100.0  ;;  %v81_v22 = vmul.f32 %v71_v15, %v65_v2 }
  0x19   :  { %v80_v23 = vmax.f32 %v78_v19, -100.0  ;;  %v82_v24 = vmul.f32 %v72_v18, %v66_v3 }
  0x1a   :  { %v85_v25 = vmul.f32 %v83_v17, %v79_v21 }
  0x1b   :  { %v86_v26 = vmul.f32 %v84_v20, %v80_v23 }
  0x1c   :  { %v87_v27 = vadd.f32 %v85_v25, %v81_v22 }
  0x1d   :  { %v88_v28 = vadd.f32 %v86_v26, %v82_v24 }
  0x1e   :  { %v89_v29 = vsub.f32 0.0, %v87_v27 }
  0x1f   :  { %v90_v30 = vsub.f32 0.0, %v88_v28 }
  0x21   :  { %v92_v31 = vadd.f32 %v90_v30, %v89_v29 }
  0x23   :  { %111 = vadd.xlane.f32.xlu0 %v92_v31 }
  0x2b   :  { %121 = vadd.xlane.f32.xlu0 %v98_v34 }
  0x85   :  { %v132_v35 = vpop.xlane.xlu1 %131 }
  0x86   :  { %v133_v37 = vrot.slane %v132_v35, 4 }
  0x88   :  { %v134_v40 = vadd.f32 %v133_v37, %v132_v35 }
  0x8a   :  { %v135_v43 = vrot.slane %v134_v40, 2 }
  0x8c   :  { %v136_v49 = vadd.f32 %v135_v43, %v134_v40 }
  0x8e   :  { %v137_v52 = vrot.slane %v136_v49, 1 }
  0x90   :  { %v138_v55 = vadd.f32 %v137_v52, %v136_v49 }
  0x96   :  { %v112_v36 = vpop.xlane.xlu0 %111 }
  0x97   :  { %v113_v38 = vrot.slane %v112_v36, 4 }
  0x99   :  { %v114_v39 = vadd.f32 %v113_v38, %v112_v36 }
  0x9b   :  { %v115_v41 = vrot.slane %v114_v39, 2 }
  0x9d   :  { %v116_v42 = vadd.f32 %v115_v41, %v114_v39 }
  0x9e   :  { %v122_v44 = vpop.xlane.xlu0 %121 }
  0x9f   :  { %v123_v45 = vrot.slane %v122_v44, 4  ;;  %v117_v46 = vrot.slane %v116_v42, 1 }
  0xa1   :  { %v124_v47 = vadd.f32 %v123_v45, %v122_v44  ;;  %v118_v48 = vadd.f32 %v117_v46, %v116_v42 }
  0xa3   :  { %v125_v50 = vrot.slane %v124_v47, 2  ;;  %170 = vpush %v118_v48 }
  0xa5   :  { %v126_v51 = vadd.f32 %v125_v50, %v124_v47 }
  0xa7   :  { %v127_v53 = vrot.slane %v126_v51, 1 }
  0xa9   :  { %v128_v54 = vadd.f32 %v127_v53, %v126_v51 }
  0xab   :  { %172 = vpush %v128_v54 }
  0xac   :  { %174 = vpush %v138_v55 }
  0xd4   :  { %s171_s0 = spop %170 }
  0xd5   :  { %v149_v61 = vstv %s171_s0 }
  0xdc   :  { %s173_s1 = spop %172 }
  0xdd   :  { %v147_v58 = vstv %s173_s1  ;;  %s175_s23 = spop %174 }
  0xde   :  { %v145_v59 = vstv %s175_s23 }
  0xdf   :  { %v146_v60 = vsel %vm144_vm0, %v145_v59, 0.0 }
  0xe0   :  { %v148_v62 = vsel %vm143_vm1, %v147_v58, %v146_v60 }
  0xe1   :  { %v150_v63 = vsel %vm142_vm2, %v149_v61, %v148_v62 }
  0xe2   :  { %151 = vst [vmem:[#allocation10] sm:$0xff] %v150_v63 }
  0xe3   :  { %162 = dma.vmem_to_hbm [thread:$0]  %s158_s22, 128, %s160_s26, [#allocation7]  }
  0xe4   :  { %265 = dma.done.wait [#allocation7], 128  }
  0xe5   :  { %266 = vsyncadd [#allocation7], 4294967168 }
  0xe6   :  { %167 = vsyncpa [#allocation6], 1 }
  0xe7   :  { %168 = vsyncpa [#allocation9], 1 }
  0xe8   :  { %169 = vsyncpa [#allocation7], 1 }

</bundles_post_ra>
